<compile_context>
chip_gen: v5e
topology: v5e:2x2
jax: 0.10.0
libtpu: 0.0.40
codegen_flags: <defaults>
</compile_context>

<pallas_src>
import numpy as np
import jax
import jax.numpy as jnp
from jax import lax
from jax.experimental import pallas as pl
from jax.experimental.pallas import tpu as pltpu


# ----------------------------------------------------------------------------
# Kernel: one grid step = Pb policies.
#
# Row index r = q*B + b enumerates (policy-in-block q, batch element b).
#   xbd[r, q*D+j]  = x[q,b,j]      if policy(r)==q else 0     (block-diag input)
#   hrows[r, i]    = pre-ReLU hidden of row r's policy        (= nodes1)
#   hbd[r, q*H+i]  = hrows[r, i]   if policy(r)==q else 0     (block-diag hidden)
#   orows[r, a]    = pre-Tanh output of row r's policy        (= nodes2)
# Trace/weight slabs live in weight layout (out, in) per policy, policies along
# the lane axis, so the clip/FMA/store path is fully lane-dense.
# ----------------------------------------------------------------------------
def hebbian_mlp_kernel(x_ref, xmask_ref, hmask_ref, s0_ref, s1_ref,
                       y_ref, s0_new_ref, s1_new_ref):
    pbb, d_in = x_ref.shape                       # (Pb*B, D_in)
    pb = xmask_ref.shape[1] // d_in               # policies per block (static)

    x = x_ref[...]                                # (Pb*B, D_in)
    xmask = xmask_ref[...]                        # (Pb*B, Pb*D_in) block-diag 0/1
    hmask = hmask_ref[...]                        # (Pb*B, Pb*H)    block-diag 0/1

    w0, lr0, e0 = s0_ref[0], s0_ref[1], s0_ref[2]            # each (H, Pb*D_in)
    wout, lrout, eout = s1_ref[0], s1_ref[1], s1_ref[2]      # each (A, Pb*H)

    # Block-diagonal input slab (lane-wise replication + mask; VPU work).
    xbd = jnp.concatenate([x] * pb, axis=1) * xmask           # (Pb*B, Pb*D_in)

    # ---- forward with OLD weights (matches module: update() runs after) ----
    # hrows = nodes1: contract the shared lane dim directly (no transposes).
    hrows = lax.dot_general(xbd, w0, (((1,), (1,)), ((), ())),
                            preferred_element_type=jnp.float32)   # (Pb*B, H)
    hbd = jnp.concatenate([hrows] * pb, axis=1) * hmask            # (Pb*B, Pb*H)
    orows = lax.dot_general(jnp.maximum(hbd, 0.0), wout,           # ReLU then MXU
                            (((1,), (1,)), ((), ())),
                            preferred_element_type=jnp.float32)    # (Pb*B, A)
    y_ref[...] = jnp.tanh(orows)                                   # nodes2 -> tanh

    # ---- Hebbian updates (pre-activation nodes, per the module) ----
    # E0^T slab += hrows^T @ xbd : the block-diagonal zeros of xbd scatter each
    # policy's rank-B outer product into its own D_in-wide column block.
    e0_new = jnp.clip(
        e0 + lax.dot_general(hrows, xbd, (((0,), (0,)), ((), ())),
                             preferred_element_type=jnp.float32),
        -1.0, 1.0)                                                 # (H, Pb*D_in)
    s0_new_ref[0] = w0 + lr0 * e0_new          # W0 += LR0 * E0'^T (layout-matched)
    s0_new_ref[1] = lr0                        # learning rates are static state
    s0_new_ref[2] = e0_new

    # Eout^T slab += orows^T @ hbd  (hbd is pre-ReLU, as in the module).
    eout_new = jnp.clip(
        eout + lax.dot_general(orows, hbd, (((0,), (0,)), ((), ())),
                               preferred_element_type=jnp.float32),
        -1.0, 1.0)                                                 # (A, Pb*H)
    s1_new_ref[0] = wout + lrout * eout_new
    s1_new_ref[1] = lrout
    s1_new_ref[2] = eout_new


# ----------------------------------------------------------------------------
# Packed-state step (the hot path for rollout loops: keep s0/s1 packed and
# donate them so input_output_aliases gives true in-place updates).
# ----------------------------------------------------------------------------
def hebbian_step_packed(x_blk, xmask, hmask, s0, s1):
    nb, pbb, d_in = x_blk.shape
    _, _, h, pbd = s0.shape
    _, _, a, pbh = s1.shape

    out_shape = (
        jax.ShapeDtypeStruct((nb, pbb, a), jnp.float32),   # y (per-row)
        jax.ShapeDtypeStruct(s0.shape, jnp.float32),       # new (W0, LR0, E0^T) slab
        jax.ShapeDtypeStruct(s1.shape, jnp.float32),       # new (Wout, LRout, Eout^T) slab
    )
    return pl.pallas_call(
        hebbian_mlp_kernel,
        out_shape=out_shape,
        grid=(nb,),
        in_specs=[
            pl.BlockSpec((None, pbb, d_in), lambda g: (g, 0, 0)),        # x
            pl.BlockSpec((pbb, pbd), lambda g: (0, 0)),                  # xmask (const)
            pl.BlockSpec((pbb, pbh), lambda g: (0, 0)),                  # hmask (const)
            pl.BlockSpec((None, 3, h, pbd), lambda g: (g, 0, 0, 0)),     # layer-0 slab
            pl.BlockSpec((None, 3, a, pbh), lambda g: (g, 0, 0, 0)),     # layer-1 slab
        ],
        out_specs=(
            pl.BlockSpec((None, pbb, a), lambda g: (g, 0, 0)),
            pl.BlockSpec((None, 3, h, pbd), lambda g: (g, 0, 0, 0)),
            pl.BlockSpec((None, 3, a, pbh), lambda g: (g, 0, 0, 0)),
        ),
        # Recurrent state: alias packed slabs so donating callers update in place.
        input_output_aliases={3: 1, 4: 2},
        compiler_params=pltpu.CompilerParams(
            dimension_semantics=("parallel",)),     # 2 blocks -> both TCs on v7x
    )(x_blk, xmask, hmask, s0, s1)


# ----------------------------------------------------------------------------
# Layout plumbing (wrapper-side, outside the kernel).
# ----------------------------------------------------------------------------
def _to_slab(a, num_blocks):
    """(P, R, C) per-policy matrices -> (NB, R, Pb*C) with policies along lanes."""
    p, r, c = a.shape
    pb = p // num_blocks
    return (a.reshape(num_blocks, pb, r, c)
             .transpose(0, 2, 1, 3)
             .reshape(num_blocks, r, pb * c))


def _from_slab(s, p):
    nb, r, pbc = s.shape
    pb = p // nb
    c = pbc // pb
    return (s.reshape(nb, r, pb, c)
             .transpose(0, 2, 1, 3)
             .reshape(p, r, c))


def pack_state(w0, lr0, e0_t, wout, lrout, eout_t, num_blocks):
    s0 = jnp.stack([_to_slab(w0, num_blocks),
                    _to_slab(lr0, num_blocks),
                    _to_slab(e0_t, num_blocks)], axis=1)   # (NB, 3, H, Pb*D_in)
    s1 = jnp.stack([_to_slab(wout, num_blocks),
                    _to_slab(lrout, num_blocks),
                    _to_slab(eout_t, num_blocks)], axis=1)  # (NB, 3, A, Pb*H)
    return s0, s1


def make_masks(pb, b, d_in, h):
    """Block-diagonal 0/1 masks (constants; built once with numpy)."""
    xmask = np.kron(np.eye(pb), np.ones((b, d_in))).astype(np.float32)  # (Pb*B, Pb*D_in)
    hmask = np.kron(np.eye(pb), np.ones((b, h))).astype(np.float32)     # (Pb*B, Pb*H)
    return jnp.asarray(xmask), jnp.asarray(hmask)


def hebbian_mlp_forward(x, w0, wout, lr0, lrout, e0_t, eout_t, *, num_blocks=None):
    """One HebbianMLP step for a population of P independent policies.

    Module-layout shapes (P = population, B = batch, D_in, H = dim_h[0], A = dim_y):
      x (P,B,D_in); w0/lr0/e0_t (P,H,D_in); wout/lrout/eout_t (P,A,H).
    Eligibility traces are carried in weight layout (= module E^T).
    Returns (y, w0_new, wout_new, e0_t_new, eout_t_new); y uses the OLD weights.

    For rollout loops, pack once with pack_state() and call hebbian_step_packed()
    directly (donating the packed slabs) to avoid repacking every step.
    """
    p, b, d_in = x.shape
    _, h, _ = w0.shape
    _, a, _ = wout.shape
    if num_blocks is None:
        num_blocks = 2 if (p >= 2 and p % 2 == 0) else 1
    assert p % num_blocks == 0, "population must divide evenly into blocks"
    pb = p // num_blocks

    s0, s1 = pack_state(w0, lr0, e0_t, wout, lrout, eout_t, num_blocks)
    x_blk = x.reshape(num_blocks, pb * b, d_in)
    xmask, hmask = make_masks(pb, b, d_in, h)

    y_blk, s0_new, s1_new = hebbian_step_packed(x_blk, xmask, hmask, s0, s1)

    y = y_blk.reshape(p, b, a)
    w0_new = _from_slab(s0_new[:, 0], p)
    e0_new = _from_slab(s0_new[:, 2], p)
    wout_new = _from_slab(s1_new[:, 0], p)
    eout_new = _from_slab(s1_new[:, 2], p)
    return y, w0_new, wout_new, e0_new, eout_new


# ----------------------------------------------------------------------------
# Pure-JAX reference (module-layout transcription of forward()+update()).
# ----------------------------------------------------------------------------
def _reference_single(x, w0, wout, lr0, lrout, e0, eout):
    h_pre = x @ w0.T                       # nodes[1] (pre-ReLU)
    h = jnp.maximum(h_pre, 0.0)
    o_pre = h @ wout.T                     # nodes[2] (pre-Tanh)
    y = jnp.tanh(o_pre)
    e0_new = jnp.clip(e0 + x.T @ h_pre, -1.0, 1.0)
    w0_new = w0 + lr0 * e0_new.T
    eout_new = jnp.clip(eout + h_pre.T @ o_pre, -1.0, 1.0)
    wout_new = wout + lrout * eout_new.T
    return y, w0_new, wout_new, e0_new, eout_new


if __name__ == "__main__":
    # Module config: dim_x=16, dim_h=[32], dim_y=8, bias=False, plastic=True,
    # discrete=False; population of 16 policies, batch 2; 2 grid blocks so the
    # per-block slabs are exactly 128 / 256 lanes wide (fully dense stores).
    P, B, D_IN, H, A = 16, 2, 16, 32, 8

    key = jax.random.PRNGKey(0)
    kx, kw0, kwo, kl0, klo, ke0, keo = jax.random.split(key, 7)

    x = jax.random.normal(kx, (P, B, D_IN), dtype=jnp.float32)

    b0 = 1.0 / jnp.sqrt(jnp.float32(D_IN))
    bo = 1.0 / jnp.sqrt(jnp.float32(H))
    w0 = jax.random.uniform(kw0, (P, H, D_IN), jnp.float32, -b0, b0)
    wout = jax.random.uniform(kwo, (P, A, H), jnp.float32, -bo, bo)
    lr0 = jax.random.uniform(kl0, (P, H, D_IN), jnp.float32, -b0, b0)
    lrout = jax.random.uniform(klo, (P, A, H), jnp.float32, -bo, bo)
    # Fresh modules start with zero traces; nonzero values exercise carry+clip.
    e0_t = jax.random.uniform(ke0, (P, H, D_IN), jnp.float32, -0.5, 0.5)
    eout_t = jax.random.uniform(keo, (P, A, H), jnp.float32, -0.5, 0.5)

    step = jax.jit(hebbian_mlp_forward)
    outs = jax.block_until_ready(step(x, w0, wout, lr0, lrout, e0_t, eout_t))

    # Reference in module layout (vmapped over the population); kernel carries
    # traces in weight layout, so transpose at the boundary for comparison.
    y_r, w0_r, wout_r, e0_r, eout_r = jax.vmap(_reference_single)(
        x, w0, wout, lr0, lrout,
        e0_t.swapaxes(-1, -2), eout_t.swapaxes(-1, -2))
    want = (y_r, w0_r, wout_r, e0_r.swapaxes(-1, -2), eout_r.swapaxes(-1, -2))

    for got, ref in zip(outs, want):
        assert got.shape == ref.shape, (got.shape, ref.shape)
        # f32 MXU vs XLA default-precision reference: small tolerance.
        assert jnp.allclose(got, ref, atol=1e-4, rtol=1e-4), \
            float(jnp.max(jnp.abs(got - ref)))

    print("KERNEL_OK")
</pallas_src>

<mosaic_0001>
module attributes {stable_mosaic.version = 11 : i64} {
  func.func @hebbian_mlp_kernel(%arg0: i32, %arg1: memref<1x16x16xf32, #tpu.memory_space<vmem>>, %arg2: memref<16x128xf32, #tpu.memory_space<vmem>>, %arg3: memref<16x256xf32, #tpu.memory_space<vmem>>, %arg4: memref<1x3x32x128xf32, #tpu.memory_space<vmem>>, %arg5: memref<1x3x8x256xf32, #tpu.memory_space<vmem>>, %arg6: memref<1x16x8xf32, #tpu.memory_space<vmem>>, %arg7: memref<1x3x32x128xf32, #tpu.memory_space<vmem>>, %arg8: memref<1x3x8x256xf32, #tpu.memory_space<vmem>>) attributes {dimension_semantics = [#tpu.dimension_semantics<parallel>], iteration_bounds = array<i64: 2>, scalar_prefetch = 0 : i64, scratch_operands = 0 : i64, tpu.core_type = #tpu.core_type<tc>, window_params = [{transform_indices = @transform_0, window_bounds = array<i64: 1, 16, 16>}, {pipeline_mode = #tpu.pipeline_mode<synchronous>, transform_indices = @transform_1, window_bounds = array<i64: 16, 128>}, {pipeline_mode = #tpu.pipeline_mode<synchronous>, transform_indices = @transform_2, window_bounds = array<i64: 16, 256>}, {transform_indices = @transform_3, window_bounds = array<i64: 1, 3, 32, 128>}, {transform_indices = @transform_4, window_bounds = array<i64: 1, 3, 8, 256>}, {transform_indices = @transform_5, window_bounds = array<i64: 1, 16, 8>}, {transform_indices = @transform_6, window_bounds = array<i64: 1, 3, 32, 128>}, {transform_indices = @transform_7, window_bounds = array<i64: 1, 3, 8, 256>}]} {
    %c0 = arith.constant 0 : index
    %c0_0 = arith.constant 0 : index
    %c0_1 = arith.constant 0 : index
    %0 = vector.load %arg1[%c0, %c0_0, %c0_1] : memref<1x16x16xf32, #tpu.memory_space<vmem>>, vector<1x16x16xf32>
    %1 = vector.shape_cast %0 : vector<1x16x16xf32> to vector<16x16xf32>
    %c0_2 = arith.constant 0 : index
    %c0_3 = arith.constant 0 : index
    %2 = vector.load %arg2[%c0_2, %c0_3] : memref<16x128xf32, #tpu.memory_space<vmem>>, vector<16x128xf32>
    %c0_4 = arith.constant 0 : index
    %c0_5 = arith.constant 0 : index
    %3 = vector.load %arg3[%c0_4, %c0_5] : memref<16x256xf32, #tpu.memory_space<vmem>>, vector<16x256xf32>
    %c0_6 = arith.constant 0 : index
    %c0_7 = arith.constant 0 : index
    %c0_8 = arith.constant 0 : index
    %c0_9 = arith.constant 0 : index
    %4 = vector.load %arg4[%c0_6, %c0_7, %c0_8, %c0_9] : memref<1x3x32x128xf32, #tpu.memory_space<vmem>>, vector<1x1x32x128xf32>
    %5 = vector.shape_cast %4 : vector<1x1x32x128xf32> to vector<32x128xf32>
    %c0_10 = arith.constant 0 : index
    %c1 = arith.constant 1 : index
    %c0_11 = arith.constant 0 : index
    %c0_12 = arith.constant 0 : index
    %6 = vector.load %arg4[%c0_10, %c1, %c0_11, %c0_12] : memref<1x3x32x128xf32, #tpu.memory_space<vmem>>, vector<1x1x32x128xf32>
    %7 = vector.shape_cast %6 : vector<1x1x32x128xf32> to vector<32x128xf32>
    %c0_13 = arith.constant 0 : index
    %c2 = arith.constant 2 : index
    %c0_14 = arith.constant 0 : index
    %c0_15 = arith.constant 0 : index
    %8 = vector.load %arg4[%c0_13, %c2, %c0_14, %c0_15] : memref<1x3x32x128xf32, #tpu.memory_space<vmem>>, vector<1x1x32x128xf32>
    %9 = vector.shape_cast %8 : vector<1x1x32x128xf32> to vector<32x128xf32>
    %c0_16 = arith.constant 0 : index
    %c0_17 = arith.constant 0 : index
    %c0_18 = arith.constant 0 : index
    %c0_19 = arith.constant 0 : index
    %10 = vector.load %arg5[%c0_16, %c0_17, %c0_18, %c0_19] : memref<1x3x8x256xf32, #tpu.memory_space<vmem>>, vector<1x1x8x256xf32>
    %11 = vector.shape_cast %10 : vector<1x1x8x256xf32> to vector<8x256xf32>
    %c0_20 = arith.constant 0 : index
    %c1_21 = arith.constant 1 : index
    %c0_22 = arith.constant 0 : index
    %c0_23 = arith.constant 0 : index
    %12 = vector.load %arg5[%c0_20, %c1_21, %c0_22, %c0_23] : memref<1x3x8x256xf32, #tpu.memory_space<vmem>>, vector<1x1x8x256xf32>
    %13 = vector.shape_cast %12 : vector<1x1x8x256xf32> to vector<8x256xf32>
    %c0_24 = arith.constant 0 : index
    %c2_25 = arith.constant 2 : index
    %c0_26 = arith.constant 0 : index
    %c0_27 = arith.constant 0 : index
    %14 = vector.load %arg5[%c0_24, %c2_25, %c0_26, %c0_27] : memref<1x3x8x256xf32, #tpu.memory_space<vmem>>, vector<1x1x8x256xf32>
    %15 = vector.shape_cast %14 : vector<1x1x8x256xf32> to vector<8x256xf32>
    %16 = tpu.concatenate %1, %1, %1, %1, %1, %1, %1, %1 in 1 : vector<16x16xf32>, vector<16x16xf32>, vector<16x16xf32>, vector<16x16xf32>, vector<16x16xf32>, vector<16x16xf32>, vector<16x16xf32>, vector<16x16xf32> -> vector<16x128xf32>
    %17 = arith.mulf %16, %2 : vector<16x128xf32>
    %cst = arith.constant dense<0.000000e+00> : vector<16x32xf32>
    %18 = tpu.matmul %17, %5, %cst {dimension_numbers = #tpu.dot_dimension_numbers<[1], [1], [0], [0], [0, 0, 1, 0], [], []>} : vector<16x128xf32>, vector<32x128xf32>, vector<16x32xf32> -> vector<16x32xf32>
    %19 = tpu.concatenate %18, %18, %18, %18, %18, %18, %18, %18 in 1 : vector<16x32xf32>, vector<16x32xf32>, vector<16x32xf32>, vector<16x32xf32>, vector<16x32xf32>, vector<16x32xf32>, vector<16x32xf32>, vector<16x32xf32> -> vector<16x256xf32>
    %20 = arith.mulf %19, %3 : vector<16x256xf32>
    %cst_28 = arith.constant 0.000000e+00 : f32
    %21 = vector.broadcast %cst_28 : f32 to vector<16x256xf32>
    %22 = arith.maximumf %20, %21 : vector<16x256xf32>
    %cst_29 = arith.constant dense<0.000000e+00> : vector<16x8xf32>
    %23 = tpu.matmul %22, %11, %cst_29 {dimension_numbers = #tpu.dot_dimension_numbers<[1], [1], [0], [0], [0, 0, 1, 0], [], []>} : vector<16x256xf32>, vector<8x256xf32>, vector<16x8xf32> -> vector<16x8xf32>
    %24 = math.tanh %23 : vector<16x8xf32>
    %c0_30 = arith.constant 0 : index
    %c0_31 = arith.constant 0 : index
    %c0_32 = arith.constant 0 : index
    %25 = vector.load %arg6[%c0_30, %c0_31, %c0_32] : memref<1x16x8xf32, #tpu.memory_space<vmem>>, vector<1x16x8xf32>
    %26 = vector.shape_cast %25 : vector<1x16x8xf32> to vector<16x8xf32>
    %27 = vector.shape_cast %24 : vector<16x8xf32> to vector<1x16x8xf32>
    tpu.vector_store %arg6[%c0_30, %c0_31, %c0_32], %27 {strides = array<i32>} : memref<1x16x8xf32, #tpu.memory_space<vmem>>, vector<1x16x8xf32>,
    %cst_33 = arith.constant dense<0.000000e+00> : vector<32x128xf32>
    %28 = tpu.matmul %18, %17, %cst_33 {dimension_numbers = #tpu.dot_dimension_numbers<[0], [0], [1], [1], [0, 1, 1, 1], [], []>} : vector<16x32xf32>, vector<16x128xf32>, vector<32x128xf32> -> vector<32x128xf32>
    %29 = arith.addf %9, %28 : vector<32x128xf32>
    %cst_34 = arith.constant -1.000000e+00 : f32
    %cst_35 = arith.constant 1.000000e+00 : f32
    %30 = vector.broadcast %cst_34 : f32 to vector<32x128xf32>
    %31 = arith.maximumf %30, %29 : vector<32x128xf32>
    %32 = vector.broadcast %cst_35 : f32 to vector<32x128xf32>
    %33 = arith.minimumf %32, %31 : vector<32x128xf32>
    %34 = arith.mulf %7, %33 : vector<32x128xf32>
    %35 = arith.addf %5, %34 : vector<32x128xf32>
    %c0_36 = arith.constant 0 : index
    %c0_37 = arith.constant 0 : index
    %c0_38 = arith.constant 0 : index
    %c0_39 = arith.constant 0 : index
    %36 = vector.load %arg7[%c0_36, %c0_37, %c0_38, %c0_39] : memref<1x3x32x128xf32, #tpu.memory_space<vmem>>, vector<1x1x32x128xf32>
    %37 = vector.shape_cast %36 : vector<1x1x32x128xf32> to vector<32x128xf32>
    %38 = vector.shape_cast %35 : vector<32x128xf32> to vector<1x1x32x128xf32>
    tpu.vector_store %arg7[%c0_36, %c0_37, %c0_38, %c0_39], %38 {strides = array<i32>} : memref<1x3x32x128xf32, #tpu.memory_space<vmem>>, vector<1x1x32x128xf32>,
    %c0_40 = arith.constant 0 : index
    %c1_41 = arith.constant 1 : index
    %c0_42 = arith.constant 0 : index
    %c0_43 = arith.constant 0 : index
    %39 = vector.load %arg7[%c0_40, %c1_41, %c0_42, %c0_43] : memref<1x3x32x128xf32, #tpu.memory_space<vmem>>, vector<1x1x32x128xf32>
    %40 = vector.shape_cast %39 : vector<1x1x32x128xf32> to vector<32x128xf32>
    %41 = vector.shape_cast %7 : vector<32x128xf32> to vector<1x1x32x128xf32>
    tpu.vector_store %arg7[%c0_40, %c1_41, %c0_42, %c0_43], %41 {strides = array<i32>} : memref<1x3x32x128xf32, #tpu.memory_space<vmem>>, vector<1x1x32x128xf32>,
    %c0_44 = arith.constant 0 : index
    %c2_45 = arith.constant 2 : index
    %c0_46 = arith.constant 0 : index
    %c0_47 = arith.constant 0 : index
    %42 = vector.load %arg7[%c0_44, %c2_45, %c0_46, %c0_47] : memref<1x3x32x128xf32, #tpu.memory_space<vmem>>, vector<1x1x32x128xf32>
    %43 = vector.shape_cast %42 : vector<1x1x32x128xf32> to vector<32x128xf32>
    %44 = vector.shape_cast %33 : vector<32x128xf32> to vector<1x1x32x128xf32>
    tpu.vector_store %arg7[%c0_44, %c2_45, %c0_46, %c0_47], %44 {strides = array<i32>} : memref<1x3x32x128xf32, #tpu.memory_space<vmem>>, vector<1x1x32x128xf32>,
    %cst_48 = arith.constant dense<0.000000e+00> : vector<8x256xf32>
    %45 = tpu.matmul %23, %20, %cst_48 {dimension_numbers = #tpu.dot_dimension_numbers<[0], [0], [1], [1], [0, 1, 1, 1], [], []>} : vector<16x8xf32>, vector<16x256xf32>, vector<8x256xf32> -> vector<8x256xf32>
    %46 = arith.addf %15, %45 : vector<8x256xf32>
    %cst_49 = arith.constant -1.000000e+00 : f32
    %cst_50 = arith.constant 1.000000e+00 : f32
    %47 = vector.broadcast %cst_49 : f32 to vector<8x256xf32>
    %48 = arith.maximumf %47, %46 : vector<8x256xf32>
    %49 = vector.broadcast %cst_50 : f32 to vector<8x256xf32>
    %50 = arith.minimumf %49, %48 : vector<8x256xf32>
    %51 = arith.mulf %13, %50 : vector<8x256xf32>
    %52 = arith.addf %11, %51 : vector<8x256xf32>
    %c0_51 = arith.constant 0 : index
    %c0_52 = arith.constant 0 : index
    %c0_53 = arith.constant 0 : index
    %c0_54 = arith.constant 0 : index
    %53 = vector.load %arg8[%c0_51, %c0_52, %c0_53, %c0_54] : memref<1x3x8x256xf32, #tpu.memory_space<vmem>>, vector<1x1x8x256xf32>
    %54 = vector.shape_cast %53 : vector<1x1x8x256xf32> to vector<8x256xf32>
    %55 = vector.shape_cast %52 : vector<8x256xf32> to vector<1x1x8x256xf32>
    tpu.vector_store %arg8[%c0_51, %c0_52, %c0_53, %c0_54], %55 {strides = array<i32>} : memref<1x3x8x256xf32, #tpu.memory_space<vmem>>, vector<1x1x8x256xf32>,
    %c0_55 = arith.constant 0 : index
    %c1_56 = arith.constant 1 : index
    %c0_57 = arith.constant 0 : index
    %c0_58 = arith.constant 0 : index
    %56 = vector.load %arg8[%c0_55, %c1_56, %c0_57, %c0_58] : memref<1x3x8x256xf32, #tpu.memory_space<vmem>>, vector<1x1x8x256xf32>
    %57 = vector.shape_cast %56 : vector<1x1x8x256xf32> to vector<8x256xf32>
    %58 = vector.shape_cast %13 : vector<8x256xf32> to vector<1x1x8x256xf32>
    tpu.vector_store %arg8[%c0_55, %c1_56, %c0_57, %c0_58], %58 {strides = array<i32>} : memref<1x3x8x256xf32, #tpu.memory_space<vmem>>, vector<1x1x8x256xf32>,
    %c0_59 = arith.constant 0 : index
    %c2_60 = arith.constant 2 : index
    %c0_61 = arith.constant 0 : index
    %c0_62 = arith.constant 0 : index
    %59 = vector.load %arg8[%c0_59, %c2_60, %c0_61, %c0_62] : memref<1x3x8x256xf32, #tpu.memory_space<vmem>>, vector<1x1x8x256xf32>
    %60 = vector.shape_cast %59 : vector<1x1x8x256xf32> to vector<8x256xf32>
    %61 = vector.shape_cast %50 : vector<8x256xf32> to vector<1x1x8x256xf32>
    tpu.vector_store %arg8[%c0_59, %c2_60, %c0_61, %c0_62], %61 {strides = array<i32>} : memref<1x3x8x256xf32, #tpu.memory_space<vmem>>, vector<1x1x8x256xf32>,
    return
  }
  func.func @transform_0(%arg0: i32) -> (i32, i32, i32) {
    %c0_i32 = arith.constant 0 : i32
    %c0_i32_0 = arith.constant 0 : i32
    %c0_i32_1 = arith.constant 0 : i32
    return %arg0, %c0_i32, %c0_i32_0 : i32, i32, i32
  }
  func.func @transform_1(%arg0: i32) -> (i32, i32) {
    %c0_i32 = arith.constant 0 : i32
    %c0_i32_0 = arith.constant 0 : i32
    %c0_i32_1 = arith.constant 0 : i32
    return %c0_i32, %c0_i32_0 : i32, i32
  }
  func.func @transform_2(%arg0: i32) -> (i32, i32) {
    %c0_i32 = arith.constant 0 : i32
    %c0_i32_0 = arith.constant 0 : i32
    %c0_i32_1 = arith.constant 0 : i32
    return %c0_i32, %c0_i32_0 : i32, i32
  }
  func.func @transform_3(%arg0: i32) -> (i32, i32, i32, i32) {
    %c0_i32 = arith.constant 0 : i32
    %c0_i32_0 = arith.constant 0 : i32
    %c0_i32_1 = arith.constant 0 : i32
    %c0_i32_2 = arith.constant 0 : i32
    return %arg0, %c0_i32, %c0_i32_0, %c0_i32_1 : i32, i32, i32, i32
  }
  func.func @transform_4(%arg0: i32) -> (i32, i32, i32, i32) {
    %c0_i32 = arith.constant 0 : i32
    %c0_i32_0 = arith.constant 0 : i32
    %c0_i32_1 = arith.constant 0 : i32
    %c0_i32_2 = arith.constant 0 : i32
    return %arg0, %c0_i32, %c0_i32_0, %c0_i32_1 : i32, i32, i32, i32
  }
  func.func @transform_5(%arg0: i32) -> (i32, i32, i32) {
    %c0_i32 = arith.constant 0 : i32
    %c0_i32_0 = arith.constant 0 : i32
    %c0_i32_1 = arith.constant 0 : i32
    return %arg0, %c0_i32, %c0_i32_0 : i32, i32, i32
  }
  func.func @transform_6(%arg0: i32) -> (i32, i32, i32, i32) {
    %c0_i32 = arith.constant 0 : i32
    %c0_i32_0 = arith.constant 0 : i32
    %c0_i32_1 = arith.constant 0 : i32
    %c0_i32_2 = arith.constant 0 : i32
    return %arg0, %c0_i32, %c0_i32_0, %c0_i32_1 : i32, i32, i32, i32
  }
  func.func @transform_7(%arg0: i32) -> (i32, i32, i32, i32) {
    %c0_i32 = arith.constant 0 : i32
    %c0_i32_0 = arith.constant 0 : i32
    %c0_i32_1 = arith.constant 0 : i32
    %c0_i32_2 = arith.constant 0 : i32
    return %arg0, %c0_i32, %c0_i32_0, %c0_i32_1 : i32, i32, i32, i32
  }
}

</mosaic_0001>

<bundles_post_ra>
// kernel: squeeze.7
= control target key start
LH: loop header
LB: loop body
LE: loop exit
PB: predicated region body
PF: predicated region fallthrough
CT: control target
= control target key end

     0   :  { %s141_s10 = smov 96   ;;  %s142_s11 = smov 64   ;;  %vm3_vm0 = vcmask 261120   ;;  %s258_s0 = inlined_call_operand.vmem [shape: f32[2,1,8,256], index: 0, kind: input, shape index: {}]   ;;  %s259_s1 = inlined_call_operand.vmem [shape: f32[2,8,8,32], index: 1, kind: output, shape index: {}]  }
   0x1   :  { %v120_v0 = vld.sshfl [vmem:[%s258_s0 + $0x10] sm:$0xff pattern:$0xb3a29180]   ;;  %v27_v1 = vld.sshfl [vmem:[%s258_s0] sm:$0xff pattern:$0xb3a29180]  }
   0x2   :  { %42 = vrot.lane.b32.xlu1 %v120_v0, %s141_s10  ;;  %28 = vrot.lane.b32.xlu0 %v27_v1, %s141_s10  ;;  %v122_v2 = vld.sshfl [vmem:[%s258_s0 + $0x14] sm:$0xff pattern:$0xb3a29180]   ;;  %v118_v3 = vld.sshfl [vmem:[%s258_s0 + $0x4] sm:$0xff pattern:$0xb3a29180]  }
   0x3   :  { %55 = vrot.lane.b32.xlu2 %v27_v1, %s142_s11  ;;  %s143_s16 = smov 32   ;;  %v2_v7 = vld [vmem:[%s258_s0] sm:$0xff]   ;;  %v108_v8 = vld [vmem:[%s258_s0 + $0x8] sm:$0xff]   ;;  %v111_v9 = vld [vmem:[%s258_s0 + $0x10] sm:$0xff]  }
   0x4   :  { %4 = vst.msk [vmem:[%s259_s1] ss:$8 sm:$0xf] %vm3_vm0, %v2_v7   ;;  %v114_v13 = vld [vmem:[%s258_s0 + $0x18] sm:$0xff]  }
   0x5   :  { %5 = vst.msk [vmem:[%s259_s1] ss:$8 sm:$0xf0] %vm3_vm0, %v2_v7  }
   0x6   :  { %109 = vst.msk [vmem:[%s259_s1 + $0x4] ss:$8 sm:$0xf] %vm3_vm0, %v108_v8  }
   0x7   :  { %110 = vst.msk [vmem:[%s259_s1 + $0x4] ss:$8 sm:$0xf0] %vm3_vm0, %v108_v8  }
   0x8   :  { %112 = vst.msk [vmem:[%s259_s1 + $0x40] ss:$8 sm:$0xf] %vm3_vm0, %v111_v9  }
   0x9   :  { %113 = vst.msk [vmem:[%s259_s1 + $0x40] ss:$8 sm:$0xf0] %vm3_vm0, %v111_v9  }
   0xa   :  { %49 = vrot.lane.b32.xlu1 %v122_v2, %s141_s10  ;;  %35 = vrot.lane.b32.xlu0 %v118_v3, %s141_s10  ;;  %115 = vst.msk [vmem:[%s259_s1 + $0x44] ss:$8 sm:$0xf] %vm3_vm0, %v114_v13  }
   0xb   :  { %62 = vrot.lane.b32.xlu2 %v118_v3, %s142_s11  ;;  %116 = vst.msk [vmem:[%s259_s1 + $0x44] ss:$8 sm:$0xf0] %vm3_vm0, %v114_v13  }
  0x12   :  { %76 = vrot.lane.b32.xlu1 %v122_v2, %s142_s11  ;;  %69 = vrot.lane.b32.xlu0 %v120_v0, %s142_s11 }
  0x13   :  { %82 = vrot.lane.b32.xlu2 %v27_v1, %s143_s16 }
  0x1a   :  { %96 = vrot.lane.b32.xlu1 %v120_v0, %s143_s16  ;;  %89 = vrot.lane.b32.xlu0 %v118_v3, %s143_s16 }
  0x1b   :  { %103 = vrot.lane.b32.xlu2 %v122_v2, %s143_s16 }
  0x5d   :  { %v56_v4 = vpop.permute.xlu2 %55  }
  0x5e   :  { %124 = vst.msk [vmem:[%s259_s1 + $0x2] ss:$4 sm:$0xff] %vm3_vm0, %v56_v4  }
  0x65   :  { %v63_v5 = vpop.permute.xlu2 %62  }
  0x66   :  { %126 = vst.msk [vmem:[%s259_s1 + $0x22] ss:$4 sm:$0xff] %vm3_vm0, %v63_v5  }
  0x6d   :  { %v83_v6 = vpop.permute.xlu2 %82  }
  0x6e   :  { %131 = vst.msk [vmem:[%s259_s1 + $0x3] ss:$4 sm:$0xff] %vm3_vm0, %v83_v6  }
  0x74   :  { %v43_v10 = vpop.permute.xlu1 %42   ;;  %v29_v11 = vpop.permute.xlu0 %28  }
  0x75   :  { %121 = vst.msk [vmem:[%s259_s1 + $0x41] ss:$4 sm:$0xff] %vm3_vm0, %v43_v10   ;;  %v104_v12 = vpop.permute.xlu2 %103  }
  0x76   :  { %117 = vst.msk [vmem:[%s259_s1 + $0x1] ss:$4 sm:$0xff] %vm3_vm0, %v29_v11  }
  0x77   :  { %137 = vst.msk [vmem:[%s259_s1 + $0x63] ss:$4 sm:$0xff] %vm3_vm0, %v104_v12  }
  0x7c   :  { %v50_v14 = vpop.permute.xlu1 %49   ;;  %v36_v15 = vpop.permute.xlu0 %35  }
  0x7d   :  { %123 = vst.msk [vmem:[%s259_s1 + $0x61] ss:$4 sm:$0xff] %vm3_vm0, %v50_v14  }
  0x7e   :  { %119 = vst.msk [vmem:[%s259_s1 + $0x21] ss:$4 sm:$0xff] %vm3_vm0, %v36_v15  }
  0x84   :  { %v77_v16 = vpop.permute.xlu1 %76   ;;  %v70_v17 = vpop.permute.xlu0 %69  }
  0x85   :  { %130 = vst.msk [vmem:[%s259_s1 + $0x62] ss:$4 sm:$0xff] %vm3_vm0, %v77_v16  }
  0x86   :  { %128 = vst.msk [vmem:[%s259_s1 + $0x42] ss:$4 sm:$0xff] %vm3_vm0, %v70_v17  }
  0x8c   :  { %v97_v18 = vpop.permute.xlu1 %96   ;;  %v90_v19 = vpop.permute.xlu0 %89  }
  0x8d   :  { %135 = vst.msk [vmem:[%s259_s1 + $0x43] ss:$4 sm:$0xff] %vm3_vm0, %v97_v18  }
  0x8e   :  { %133 = vst.msk [vmem:[%s259_s1 + $0x23] ss:$4 sm:$0xff] %vm3_vm0, %v90_v19  }

// kernel: hebbian_mlp_forward.1
= control target key start
LH: loop header
LB: loop body
LE: loop exit
PB: predicated region body
PF: predicated region fallthrough
CT: control target
= control target key end

     0   :  { %s1024_s24 = smov 0   ;;  %s1172_s0 = inlined_call_operand.vmem [shape: f32[2,16,16], index: 0, kind: input, shape index: {}]   ;;  %s1173_s1 = inlined_call_operand.vmem [shape: f32[16,128], index: 1, kind: input, shape index: {}]   ;;  %s1174_s2 = inlined_call_operand.vmem [shape: f32[16,256], index: 2, kind: input, shape index: {}]   ;;  %s1175_s3 = inlined_call_operand.vmem [shape: f32[2,3,32,128], index: 3, kind: input, shape index: {}, may-alias: {3,6}]   ;;  %s1176_s4 = inlined_call_operand.vmem [shape: f32[2,3,8,256], index: 4, kind: input, shape index: {}, may-alias: {4,7}]   ;;  %s1177_s5 = inlined_call_operand.vmem [shape: f32[2,16,8], index: 5, kind: output, shape index: {0}]   ;;  %s1178_s6 = inlined_call_operand.vmem [shape: f32[2,3,32,128], index: 6, kind: output, shape index: {1}, may-alias: {3,6}]   ;;  %s1179_s7 = inlined_call_operand.vmem [shape: f32[2,3,8,256], index: 7, kind: output, shape index: {2}, may-alias: {4,7}]  }
   0x1 LB: > { %s894_s25 = sadd.s32 4294967295, %s975_s24   ;;  %p898_p0 = scmp.ge.s32.totalorder %s975_s24, 1  ;;  %s975_s24 = sphi %s1024_s24, %s18_s24  }
   0x2   : > { %p262_p1 = scmp.lt.s32.totalorder %s975_s24, 3 }
   0x4   : > { %p263_p2 = pnand %p898_p0, %p262_p1 }
   0x5   : > { %p314_p3 = scmp.lt.s32.totalorder (!%p263_p2), %s894_s25, 1  ;;  %s977_s30 = smov (!%p263_p2), 16  }
   0x6   : > { %266 = sbr.rel (%p263_p2) target bundleno = 845 (0x34d), region = 40  ;;  %s978_s8 = smov (!%p263_p2), 48  }
   0x7   : > { %s979_s9 = smov (!%p263_p2), 80   ;;  %s980_s10 = smov (!%p263_p2), 32  }
   0x8   : > { %s981_s11 = smov (!%p263_p2), 64   ;;  %s982_s12 = smov (!%p263_p2), 96  }
   0x9   : > { %s983_s13 = smov (!%p263_p2), 112  }
   0xb   : > { %s1181_s25 = smov (!%p314_p3, %s894_s25), 1  ;;  %vm418_vm0 = vcmask 130048   ;;  %vm421_vm1 = vcmask 261120   ;;  %vm424_vm2 = vcmask 392192   ;;  %vm427_vm3 = vcmask 523264   ;;  %v346_v17 = vld [vmem:[%s1173_s1] sm:$0xff] }
   0xc   : > { %s945_s26 = sshll.u32 %s1181_s25, 4  ;;  %s947_s14 = smul.u32 96, %s1181_s25  ;;  %vm430_vm4 = vcmask 654336   ;;  %vm433_vm5 = vcmask 785408   ;;  %vm436_vm6 = vcmask 916480   ;;  %v347_v34 = vld [vmem:[%s1173_s1 + $0x8] sm:$0xff] }
   0xd   : > { %s318_s29 = scalar_lea.vmem %s1172_s0, %s945_s26  ;;  %s948_s22 = smul.u32 48, %s1181_s25  ;;  %v348_v46 = vld [vmem:[%s1174_s2] sm:$0xff]  ;;  %v349_v47 = vld [vmem:[%s1174_s2 + $0x8] sm:$0xff]  ;;  %v350_v58 = vld [vmem:[%s1174_s2 + $0x10] sm:$0xff]  ;;  %vm546_vm7 = vcmask 64512  }
   0xe   : > { %v344_v0 = vld [vmem:[%s318_s29] sm:$0xff]  ;;  %v345_v1 = vld [vmem:[%s318_s29 + $0x8] sm:$0xff]  ;;  %s1052_s17 = scalar_lea.vmem %s1175_s3, %s947_s14  ;;  %v351_v59 = vld [vmem:[%s1174_s2 + $0x18] sm:$0xff]  ;;  %s333_s18 = scalar_lea.vmem %s1177_s5, %s945_s26 }
   0xf   : > { %376 = vrot.lane.b32.xlu0 %v344_v0, %s977_s30  ;;  %388 = vrot.lane.b32.xlu1 %v344_v0, %s978_s8  ;;  %v1055_v2 = vld [vmem:[%s1052_s17 + $0x18] sm:$0xff]  ;;  %v1059_v3 = vld [vmem:[%s1052_s17 + $0x10] sm:$0xff]  ;;  %s1102_s28 = scalar_lea.vmem %s1176_s4, %s948_s22  ;;  %s338_s20 = scalar_lea.vmem %s1178_s6, %s947_s14 }
  0x10   : > { %400 = vrot.lane.b32.xlu2 %v344_v0, %s979_s9  ;;  %453 = vmatpush.xpose.msra.mxu0 %v1055_v2  ;;  %v1063_v4 = vld [vmem:[%s1052_s17 + $0x8] sm:$0xff]  ;;  %v1067_v5 = vld [vmem:[%s1052_s17] sm:$0xff]  ;;  %s343_s14 = scalar_lea.vmem %s1179_s7, %s948_s22 }
  0x11   : > { %v1105_v40 = vld [vmem:[%s1102_s28] sm:$0xff]  ;;  %v1108_v41 = vld [vmem:[%s1102_s28 + $0x8] sm:$0xff] }
  0x12   : > { %513 = vmatpush.xpose.msra.mxu1 %v1105_v40  ;;  %536 = vmatpush.xpose.msra.mxu2 %v1108_v41 }
  0x14   : > { %454 = vmatpush.xpose.msra.mxu0 %v1059_v3 }
  0x17   : > { %382 = vrot.lane.b32.xlu0 %v344_v0, %s980_s10  ;;  %394 = vrot.lane.b32.xlu1 %v344_v0, %s981_s11 }
  0x18   : > { %406 = vrot.lane.b32.xlu2 %v344_v0, %s982_s12  ;;  %455 = vmatpush.xpose.msra.mxu0 %v1063_v4 }
  0x1c   : > { %456 = vmatpush.xpose.msra.mxu0 %v1067_v5 }
  0x1f   : > { %412 = vrot.lane.b32.xlu0 %v344_v0, %s983_s13  ;;  %378 = vrot.lane.b32.xlu1 %v345_v1, %s977_s30 }
  0x20   : > { %384 = vrot.lane.b32.xlu2 %v345_v1, %s980_s10 }
  0x27   : > { %390 = vrot.lane.b32.xlu0 %v345_v1, %s978_s8  ;;  %396 = vrot.lane.b32.xlu1 %v345_v1, %s981_s11 }
  0x28   : > { %402 = vrot.lane.b32.xlu2 %v345_v1, %s979_s9 }
  0x2f   : > { %408 = vrot.lane.b32.xlu0 %v345_v1, %s982_s12  ;;  %414 = vrot.lane.b32.xlu1 %v345_v1, %s983_s13 }
  0x6a   : > { %v401_v6 = vpop.permute.xlu2 %400 }
  0x72   : > { %v407_v13 = vpop.permute.xlu2 %406 }
  0x7a   : > { %v385_v23 = vpop.permute.xlu2 %384 }
  0x81   : > { %v377_v7 = vpop.permute.xlu0 %376  ;;  %v389_v8 = vpop.permute.xlu1 %388 }
  0x82   : > { %v419_v9 = vsel %vm418_vm0, %v344_v0, %v377_v7  ;;  %v403_v30 = vpop.permute.xlu2 %402 }
  0x89   : > { %v383_v10 = vpop.permute.xlu0 %382  ;;  %v395_v11 = vpop.permute.xlu1 %394 }
  0x8a   : > { %v422_v12 = vsel %vm421_vm1, %v419_v9, %v383_v10 }
  0x8b   : > { %v425_v14 = vsel %vm424_vm2, %v422_v12, %v389_v8 }
  0x8c   : > { %v428_v15 = vsel %vm427_vm3, %v425_v14, %v395_v11 }
  0x8d   : > { %v431_v16 = vsel %vm430_vm4, %v428_v15, %v401_v6 }
  0x8e   : > { %v434_v18 = vsel %vm433_vm5, %v431_v16, %v407_v13 }
  0x91   : > { %v413_v19 = vpop.permute.xlu0 %412  ;;  %v379_v20 = vpop.permute.xlu1 %378 }
  0x92   : > { %v437_v21 = vsel %vm436_vm6, %v434_v18, %v413_v19  ;;  %v420_v24 = vsel %vm418_vm0, %v345_v1, %v379_v20 }
  0x93   : > { %v439_v22 = vmul.f32 %v437_v21, %v346_v17  ;;  %v423_v27 = vsel %vm421_vm1, %v420_v24, %v385_v23  ;;  %v911_v21 = vld [vmem:[%s1052_s17 + $0x40] sm:$0xff]  ;;  %v912_v24 = vld [vmem:[%s1052_s17 + $0x48] sm:$0xff] }
  0x95   : > { %457 = vmatmul.f32.vlgmr.msra.gmra.mxu0 %v439_v22 }
  0x99   : > { %v391_v25 = vpop.permute.xlu0 %390  ;;  %v397_v26 = vpop.permute.xlu1 %396 }
  0x9a   : > { %v426_v28 = vsel %vm424_vm2, %v423_v27, %v391_v25 }
  0x9b   : > { %v429_v29 = vsel %vm427_vm3, %v426_v28, %v397_v26  ;;  %v913_v26 = vld [vmem:[%s1052_s17 + $0x50] sm:$0xff] }
  0x9c   : > { %v432_v31 = vsel %vm430_vm4, %v429_v29, %v403_v30  ;;  %v907_v29 = vld [vmem:[%s1052_s17 + $0x20] sm:$0xff] }
  0xa1   : > { %v409_v32 = vpop.permute.xlu0 %408  ;;  %v415_v33 = vpop.permute.xlu1 %414 }
  0xa2   : > { %v435_v35 = vsel %vm433_vm5, %v432_v31, %v409_v32 }
  0xa3   : > { %v438_v36 = vsel %vm436_vm6, %v435_v35, %v415_v33  ;;  %v908_v33 = vld [vmem:[%s1052_s17 + $0x28] sm:$0xff]  ;;  %v909_v35 = vld [vmem:[%s1052_s17 + $0x30] sm:$0xff] }
  0xa4   : > { %v440_v37 = vmul.f32 %v438_v36, %v347_v34 }
  0xa6   : > { %460 = vmatmul.f32.gmra.mxu0 %v440_v37  ;;  %607 = vmatpush.msra.mxu3 %v440_v37 }
  0xa8   : > { %608 = vmatpush.msra.mxu3 %v439_v22 }
 0x112   : > { %v458_v38 = vpop.f32.mrf.mxu0 }
 0x113   : > { %478 = vrot.lane.b32.xlu1 %v458_v38, %s982_s12  ;;  %472 = vrot.lane.b32.xlu0 %v458_v38, %s981_s11 }
 0x114   : > { %466 = vrot.lane.b32.xlu2 %v458_v38, %s980_s10 }
 0x123   : > { %v461_v39 = vpop.f32.mrf.mxu0 }
 0x124   : > { %480 = vrot.lane.b32.xlu1 %v461_v39, %s982_s12  ;;  %474 = vrot.lane.b32.xlu0 %v461_v39, %s981_s11 }
 0x125   : > { %468 = vrot.lane.b32.xlu2 %v461_v39, %s980_s10 }
 0x14b   : > { %549 = vxpose.xlu2.b32.start [1/2] (short) (narrow) %v458_v38, 32 }
 0x153   : > { %550 = vxpose.xlu2.b32.end [2/2] (short) (narrow) %v461_v39, 32 }
 0x16e   : > { %v467_v42 = vpop.permute.xlu2 %466 }
 0x16f   : > { %v484_v43 = vsel %vm421_vm1, %v458_v38, %v467_v42  ;;  %v910_v42 = vld [vmem:[%s1052_s17 + $0x38] sm:$0xff] }
 0x17f   : > { %v469_v54 = vpop.permute.xlu2 %468 }
 0x180   : > { %v485_v55 = vsel %vm421_vm1, %v461_v39, %v469_v54 }
 0x185   : > { %v479_v44 = vpop.permute.xlu1 %478  ;;  %v473_v45 = vpop.permute.xlu0 %472 }
 0x186   : > { %v486_v48 = vsel %vm427_vm3, %v484_v43, %v473_v45  ;;  %v914_v43 = vld [vmem:[%s1052_s17 + $0x58] sm:$0xff] }
 0x187   : > { %v488_v49 = vsel %vm433_vm5, %v486_v48, %v479_v44  ;;  %927 = vst [vmem:[%s338_s20 + $0x20] sm:$0xff] %v907_v29  ;;  %v918_v44 = vld [vmem:[%s1102_s28 + $0x28] sm:$0xff] }
 0x188   : > { %v490_v50 = vmul.f32 %v488_v49, %v348_v46  ;;  %v491_v51 = vmul.f32 %v488_v49, %v349_v47  ;;  %928 = vst [vmem:[%s338_s20 + $0x28] sm:$0xff] %v908_v33 }
 0x189   : > { %929 = vst [vmem:[%s338_s20 + $0x30] sm:$0xff] %v909_v35 }
 0x18a   : > { %v494_v52 = vmax.f32 %v490_v50, 0.0  ;;  %v495_v53 = vmax.f32 %v491_v51, 0.0  ;;  %930 = vst [vmem:[%s338_s20 + $0x38] sm:$0xff] %v910_v42 }
 0x18c   : > { %514 = vmatmul.f32.vlgmr.msra.gmra.mxu1 %v494_v52  ;;  %537 = vmatmul.f32.vlgmr.msra.gmra.mxu2 %v495_v53 }
 0x196   : > { %v481_v56 = vpop.permute.xlu1 %480  ;;  %v475_v57 = vpop.permute.xlu0 %474 }
 0x197   : > { %v487_v60 = vsel %vm427_vm3, %v485_v55, %v475_v57 }
 0x198   : > { %v489_v61 = vsel %vm433_vm5, %v487_v60, %v481_v56 }
 0x199   : > { %v492_v62 = vmul.f32 %v489_v61, %v350_v58  ;;  %v493_v63 = vmul.f32 %v489_v61, %v351_v59 }
 0x19b   : > { %705 = vmatpush.msrb.mxu1 %v492_v62  ;;  %725 = vmatpush.msrb.mxu2 %v493_v63  ;;  %v496_v0 = vmax.f32 %v492_v62, 0.0  ;;  %v497_v1 = vmax.f32 %v493_v63, 0.0 }
 0x19d   : > { %517 = vmatmul.f32.gmra.mxu1 %v496_v0  ;;  %540 = vmatmul.f32.gmra.mxu2 %v497_v1 }
 0x19e   : > { %706 = vmatpush.msrb.mxu1 %v490_v50  ;;  %726 = vmatpush.msrb.mxu2 %v491_v51 }
 0x1e4   : > { %v565_v6 = vpop.trf.xlu2 }
 0x1e5   : > { %919 = vmatmul.msk.f32.vlgmr.msra.gmra.mxu3 %vm418_vm0, %v565_v6 }
 0x1ec   : > { %v566_v10 = vpop.trf.xlu2 }
 0x1ed   : > { %920 = vmatmul.msk.f32.gmra.mxu3 %vm418_vm0, %v566_v10 }
 0x1f4   : > { %v567_v12 = vpop.trf.xlu2 }
 0x1f5   : > { %921 = vmatmul.msk.f32.gmra.mxu3 %vm418_vm0, %v567_v12 }
 0x1fc   : > { %v568_v16 = vpop.trf.xlu2 }
 0x1fd   : > { %922 = vmatmul.msk.f32.gmra.mxu3 %vm418_vm0, %v568_v16 }
 0x209   : > { %v515_v7 = vpop.f32.mrf.mxu1 }
 0x20f   : > { %v538_v8 = vpop.f32.mrf.mxu2 }
 0x210   : > { %v539_v9 = vadd.f32 %v538_v8, %v515_v7 }
 0x212   : > { %965 = vtanh.f32 %v539_v9  ;;  %656 = vxpose.xlu0.b32.start [1/2] (short) (narrow) %v539_v9, 8 }
 0x218   : > { %v966_v11 = vpop.eup %965 }
 0x219   : > { %547 = vst.msk [vmem:[%s333_s18] sm:$0xff] %vm546_vm7, %v966_v11 }
 0x21a   : > { %v518_v13 = vpop.f32.mrf.mxu1 }
 0x220   : > { %v541_v14 = vpop.f32.mrf.mxu2 }
 0x221   : > { %v542_v15 = vadd.f32 %v541_v14, %v518_v13 }
 0x223   : > { %967 = vtanh.f32 %v542_v15  ;;  %657 = vxpose.xlu0.b32.end [2/2] (short) (narrow) %v542_v15, 8 }
 0x229   : > { %v968_v17 = vpop.eup %967 }
 0x22a   : > { %548 = vst.msk [vmem:[%s333_s18 + $0x8] sm:$0xff] %vm546_vm7, %v968_v17 }
 0x268   : > { %v610_v19 = vpop.f32.mrf.mxu3 }
 0x269   : > { %v622_v23 = vadd.f32 %v911_v21, %v610_v19 }
 0x26b   : > { %v923_v28 = vclamps-f32 %v622_v23, 1.0 }
 0x26d   : > { %v634_v32 = vmul.f32 %v923_v28, %v907_v29  ;;  %931 = vst [vmem:[%s338_s20 + $0x40] sm:$0xff] %v923_v28 }
 0x26f   : > { %v638_v37 = vadd.f32 %v634_v32, %v1067_v5  ;;  %v916_v5 = vld [vmem:[%s1102_s28 + $0x18] sm:$0xff] }
 0x270   : > { %v613_v20 = vpop.f32.mrf.mxu3 }
 0x271   : > { %v623_v25 = vadd.f32 %v912_v24, %v613_v20  ;;  %642 = vst [vmem:[%s338_s20] sm:$0xff] %v638_v37 }
 0x273   : > { %v924_v30 = vclamps-f32 %v623_v25, 1.0 }
 0x275   : > { %v635_v34 = vmul.f32 %v924_v30, %v908_v33  ;;  %932 = vst [vmem:[%s338_s20 + $0x48] sm:$0xff] %v924_v30 }
 0x277   : > { %v639_v38 = vadd.f32 %v635_v34, %v1063_v4  ;;  %v917_v4 = vld [vmem:[%s1102_s28 + $0x20] sm:$0xff] }
 0x278   : > { %v616_v22 = vpop.f32.mrf.mxu3 }
 0x279   : > { %v624_v27 = vadd.f32 %v913_v26, %v616_v22  ;;  %643 = vst [vmem:[%s338_s20 + $0x8] sm:$0xff] %v639_v38 }
 0x27b   : > { %v925_v31 = vclamps-f32 %v624_v27, 1.0 }
 0x27d   : > { %v636_v36 = vmul.f32 %v925_v31, %v909_v35  ;;  %933 = vst [vmem:[%s338_s20 + $0x50] sm:$0xff] %v925_v31 }
 0x27f   : > { %v640_v39 = vadd.f32 %v636_v36, %v1059_v3  ;;  %v915_v3 = vld [vmem:[%s1102_s28 + $0x10] sm:$0xff] }
 0x280   : > { %939 = vst [vmem:[%s343_s14 + $0x10] sm:$0xff] %v915_v3  ;;  %v619_v45 = vpop.f32.mrf.mxu3 }
 0x281   : > { %644 = vst [vmem:[%s338_s20 + $0x10] sm:$0xff] %v640_v39  ;;  %v625_v46 = vadd.f32 %v914_v43, %v619_v45 }
 0x282   : > { %940 = vst [vmem:[%s343_s14 + $0x18] sm:$0xff] %v916_v5 }
 0x283   : > { %v926_v47 = vclamps-f32 %v625_v46, 1.0 }
 0x285   : > { %v637_v48 = vmul.f32 %v926_v47, %v910_v42  ;;  %934 = vst [vmem:[%s338_s20 + $0x58] sm:$0xff] %v926_v47 }
 0x287   : > { %v641_v49 = vadd.f32 %v637_v48, %v1055_v2 }
 0x289   : > { %645 = vst [vmem:[%s338_s20 + $0x18] sm:$0xff] %v641_v49 }
 0x2bf   : > { %v672_v18 = vpop.trf.xlu0 }
 0x2c0   : > { %935 = vmatmul.msk.f32.vlgmr.msrb.gmra.mxu1 %vm418_vm0, %v672_v18  ;;  %936 = vmatmul.msk.f32.vlgmr.msrb.gmra.mxu2 %vm418_vm0, %v672_v18 }
 0x33d   : > { %v708_v50 = vpop.f32.mrf.mxu1 }
 0x33e   : > { %v731_v51 = vadd.f32 %v917_v4, %v708_v50 }
 0x340   : > { %v937_v52 = vclamps-f32 %v731_v51, 1.0 }
 0x342   : > { %v737_v53 = vmul.f32 %v937_v52, %v915_v3  ;;  %941 = vst [vmem:[%s343_s14 + $0x20] sm:$0xff] %v937_v52 }
 0x343   : > { %v728_v54 = vpop.f32.mrf.mxu2 }
 0x344   : > { %v739_v55 = vadd.f32 %v737_v53, %v1105_v40  ;;  %v732_v56 = vadd.f32 %v918_v44, %v728_v54 }
 0x346   : > { %v938_v57 = vclamps-f32 %v732_v56, 1.0  ;;  %741 = vst [vmem:[%s343_s14] sm:$0xff] %v739_v55 }
 0x348   : > { %v738_v58 = vmul.f32 %v938_v57, %v916_v5  ;;  %942 = vst [vmem:[%s343_s14 + $0x28] sm:$0xff] %v938_v57 }
 0x34a   : > { %v740_v59 = vadd.f32 %v738_v58, %v1108_v41 }
 0x34c   : > { %742 = vst [vmem:[%s343_s14 + $0x8] sm:$0xff] %v740_v59 }
 0x34d PF: > { %s18_s24 = sadd.s32 1, %s975_s24  }
 0x34e   : > { %p15_p4 = scmp.ge.s32.totalorder %s18_s24, 4  }
 0x350   :  { %17 = sbr.rel (!%p15_p4) target bundleno = 1 (0x1), region = 108 }

</bundles_post_ra>
